<compile_context>
chip_gen: v7x
topology: tpu7x:2x2x1
jax: 0.10.0
libtpu: 0.0.40
codegen_flags: <defaults>
</compile_context>

<pallas_src>
import math

import numpy as np
import jax
import jax.numpy as jnp
from jax.experimental import pallas as pl
from jax.experimental.pallas import tpu as pltpu

_LANES = 128


def _round_up(a, b):
    return -(-a // b) * b


# ----------------------------------------------------------------------------
# Kernels
# ----------------------------------------------------------------------------
def _compute_arg(x_ref, e_ref, ph_ref):
    """arg[r, k] = freq(k) * x[r, src(k)] + phase(k), computed exactly.

    x_ref : (tile, G*C)  f32   packed input rows
    e_ref : (G*C, W)     bf16  constant selection matrix (powers of two / 0)
    ph_ref: (1, W)       f32   0 on sin lanes, pi/2 on cos lanes
    """
    x = x_ref[...]
    # Exact 3-way bf16 split: hi + mid + lo == x, each piece bf16-representable,
    # so the bf16 MXU matmuls reconstruct the f32 argument exactly.
    hi = x.astype(jnp.bfloat16)
    r1 = x - hi.astype(jnp.float32)
    mid = r1.astype(jnp.bfloat16)
    lo = (r1 - mid.astype(jnp.float32)).astype(jnp.bfloat16)
    e = e_ref[...]
    arg = jnp.dot(hi, e, preferred_element_type=jnp.float32)
    arg = arg + jnp.dot(mid, e, preferred_element_type=jnp.float32)
    arg = arg + jnp.dot(lo, e, preferred_element_type=jnp.float32)
    return arg + ph_ref[...]


def _freq_encode_kernel(x_ref, e_ref, ph_ref, o_ref):
    o_ref[...] = jnp.sin(_compute_arg(x_ref, e_ref, ph_ref)).astype(o_ref.dtype)


def _freq_encode_kernel_masked(x_ref, e_ref, ph_ref, sc_ref, o_ref):
    out = jnp.sin(_compute_arg(x_ref, e_ref, ph_ref)) * sc_ref[...]
    o_ref[...] = out.astype(o_ref.dtype)


# ----------------------------------------------------------------------------
# Constant tables / mask
# ----------------------------------------------------------------------------
def _build_tables(in_channels, n_frequencies, group):
    """Selection matrix E (G*C, W) and phase row (1, W) for the packed layout."""
    c_dim, f_dim, g = in_channels, n_frequencies, group
    d_out = 2 * f_dim * c_dim
    w = g * d_out
    k = np.arange(w)
    j = k % d_out                      # feature index within one row's encoding
    f = j // (2 * c_dim)               # frequency index
    is_cos = (j // c_dim) % 2          # 0 -> sin lane, 1 -> cos lane
    c = j % c_dim                      # channel
    src = (k // d_out) * c_dim + c     # source column in the packed input row
    e = np.zeros((g * c_dim, w), np.float32)
    e[src, k] = 2.0 ** f               # exact powers of two (bf16-exact)
    phase = is_cos.astype(np.float32) * np.float32(np.pi / 2.0)
    return (jnp.asarray(e, dtype=jnp.bfloat16),
            jnp.asarray(phase[None, :], dtype=jnp.float32))


def _frequency_mask(n_frequencies, n_masking_step, global_step):
    """Mirror of VanillaFrequency.update_step.  None => identity (all-ones)."""
    if n_masking_step <= 0 or global_step is None:
        return None
    if isinstance(global_step, (int, float)) and global_step >= n_masking_step:
        return None                    # statically all-ones -> unmasked kernel
    ramp = (global_step / n_masking_step * n_frequencies
            - jnp.arange(n_frequencies, dtype=jnp.float32))
    return ((1.0 - jnp.cos(jnp.pi * jnp.clip(ramp, 0.0, 1.0))) / 2.0
            ).astype(jnp.float32)


# ----------------------------------------------------------------------------
# Tiling
# ----------------------------------------------------------------------------
def _pick_row_tile(nq, gc, w, out_itemsize, vmem_budget=8 * 1024 * 1024):
    """Row tile: as big as the VMEM budget allows, even #steps for v7x 2xTC."""
    if nq <= 16:
        return nq
    # double-buffered input/output blocks + ~3 f32-sized temporaries per row
    per_row = 2 * 4 * _round_up(gc, _LANES) + 2 * out_itemsize * w + 3 * 4 * w
    tile = max(16, min(2048, (vmem_budget // per_row) // 16 * 16))
    steps = -(-nq // tile)
    if steps < 2:
        steps = 2                      # give both v7x TensorCores work
    if steps % 2:
        steps += 1                     # even split across the two cores
    tile = min(tile, max(16, _round_up(-(-nq // steps), 16)))
    return tile


# ----------------------------------------------------------------------------
# Public wrapper
# ----------------------------------------------------------------------------
def vanilla_frequency(x, n_frequencies, n_masking_step=0, global_step=None,
                      *, out_dtype=jnp.float32):
    """JAX/Pallas equivalent of VanillaFrequency.forward.

    x: (..., in_channels) float array.
    Returns (..., in_channels * 2 * n_frequencies) in the exact PyTorch
    column order [sin(f0 x) | cos(f0 x) | sin(f1 x) | cos(f1 x) | ...].
    """
    in_channels = x.shape[-1]
    d_out = in_channels * 2 * n_frequencies
    lead_shape = x.shape[:-1]
    n_rows = math.prod(lead_shape) if lead_shape else 1
    if n_rows == 0 or d_out == 0:
        return jnp.zeros((*lead_shape, d_out), dtype=out_dtype)

    # Pack `group` input rows per kernel row so the kernel's last dim is a
    # multiple of 128 lanes and the epilogue reshape is free.
    group = _LANES // math.gcd(d_out, _LANES)
    w = group * d_out
    gc = group * in_channels

    nq = -(-n_rows // group)
    nq = _round_up(nq, 8)              # keep the matmul M-dim >= 8 sublanes
    n_pad = nq * group

    x2 = x.reshape(n_rows, in_channels).astype(jnp.float32)
    if n_pad != n_rows:                # pad only when actually needed
        x2 = jnp.pad(x2, ((0, n_pad - n_rows), (0, 0)))
    xq = x2.reshape(nq, gc)

    e_mat, phase = _build_tables(in_channels, n_frequencies, group)
    mask = _frequency_mask(n_frequencies, n_masking_step, global_step)

    out_isz = jnp.dtype(out_dtype).itemsize
    tile = _pick_row_tile(nq, gc, w, out_isz)
    grid = (pl.cdiv(nq, tile),)

    x_spec = pl.BlockSpec((tile, gc), lambda i: (i, 0))
    e_spec = pl.BlockSpec((gc, w), lambda i: (0, 0))
    row_spec = pl.BlockSpec((1, w), lambda i: (0, 0))
    o_spec = pl.BlockSpec((tile, w), lambda i: (i, 0))

    cost = pl.CostEstimate(
        flops=nq * w * (6 * gc + 4),           # 3 bf16 matmuls + adds/scale
        transcendentals=nq * w,                # one sin per output element
        bytes_accessed=nq * gc * 4 + gc * w * 2 + nq * w * out_isz,
    )

    if mask is None:
        kernel = _freq_encode_kernel
        in_specs = [x_spec, e_spec, row_spec]
        args = (xq, e_mat, phase)
    else:
        lane_scale = jnp.tile(jnp.repeat(mask, 2 * in_channels), group)[None, :]
        kernel = _freq_encode_kernel_masked
        in_specs = [x_spec, e_spec, row_spec, row_spec]
        args = (xq, e_mat, phase, lane_scale)

    out = pl.pallas_call(
        kernel,
        out_shape=jax.ShapeDtypeStruct((nq, w), out_dtype),
        grid_spec=pltpu.PrefetchScalarGridSpec(
            num_scalar_prefetch=0,
            grid=grid,
            in_specs=in_specs,
            out_specs=o_spec,
        ),
        compiler_params=pltpu.CompilerParams(
            dimension_semantics=("parallel",)),
        cost_estimate=cost,
    )(*args)

    # (nq, W) -> (n_pad, d_out) is row-major compatible => free reshape.
    out = out.reshape(n_pad, d_out)
    if n_pad != n_rows:
        out = out[:n_rows]             # copies only when padding was required
    return out.reshape(*lead_shape, d_out)


# ----------------------------------------------------------------------------
# Pure-JAX reference (mirrors the PyTorch loop order) and self-test
# ----------------------------------------------------------------------------
def _reference(x, n_frequencies, mask=None):
    freq_bands = 2.0 ** jnp.arange(n_frequencies, dtype=jnp.float32)
    if mask is None:
        mask = jnp.ones((n_frequencies,), jnp.float32)
    outs = []
    for f in range(n_frequencies):
        outs.append(jnp.sin(freq_bands[f] * x) * mask[f])
        outs.append(jnp.cos(freq_bands[f] * x) * mask[f])
    return jnp.concatenate(outs, axis=-1)


if __name__ == "__main__":
    key = jax.random.PRNGKey(0)
    k1, k2 = jax.random.split(key)

    # Case 1: typical coordinate input, identity mask (post-__init__ state).
    in_channels, n_freqs = 4, 6
    x = jax.random.uniform(k1, (2, 64, in_channels), jnp.float32,
                           minval=-1.0, maxval=1.0)
    out = jax.block_until_ready(vanilla_frequency(x, n_freqs))
    assert out.shape == (2, 64, in_channels * 2 * n_freqs), out.shape
    err = float(jnp.max(jnp.abs(out - _reference(x, n_freqs))))
    assert err < 2e-5, f"max abs error {err}"

    # Case 2: progressive masking active (update_step with a global_step).
    n_masking_step, global_step = 10, 3
    out_m = jax.block_until_ready(
        vanilla_frequency(x, n_freqs, n_masking_step=n_masking_step,
                          global_step=global_step))
    mask = _frequency_mask(n_freqs, n_masking_step, global_step)
    err_m = float(jnp.max(jnp.abs(out_m - _reference(x, n_freqs, mask))))
    assert err_m < 2e-5, f"max abs error (masked) {err_m}"

    # Case 3: C=3 and a row count that is not a multiple of the packing
    # factor (exercises the pad/slice epilogue path).
    x2 = jax.random.uniform(k2, (4, 50, 3), jnp.float32, minval=-1.0, maxval=1.0)
    out2 = jax.block_until_ready(vanilla_frequency(x2, 5))
    assert out2.shape == (4, 50, 3 * 2 * 5), out2.shape
    err2 = float(jnp.max(jnp.abs(out2 - _reference(x2, 5))))
    assert err2 < 2e-5, f"max abs error (C=3) {err2}"

    print("KERNEL_OK")
</pallas_src>

<mosaic_0001>
module attributes {stable_mosaic.version = 11 : i64} {
  func.func @_freq_encode_kernel(%arg0: i32, %arg1: memref<16x32xf32, #tpu.memory_space<vmem>>, %arg2: memref<32x384xbf16, #tpu.memory_space<vmem>>, %arg3: memref<1x384xf32, #tpu.memory_space<vmem>>, %arg4: memref<16x384xf32, #tpu.memory_space<vmem>>) attributes {dimension_semantics = [#tpu.dimension_semantics<parallel>], iteration_bounds = array<i64: 1>, scalar_prefetch = 0 : i64, scratch_operands = 0 : i64, tpu.core_type = #tpu.core_type<tc>, window_params = [{transform_indices = @transform_0, window_bounds = array<i64: 16, 32>}, {pipeline_mode = #tpu.pipeline_mode<synchronous>, transform_indices = @transform_1, window_bounds = array<i64: 32, 384>}, {pipeline_mode = #tpu.pipeline_mode<synchronous>, transform_indices = @transform_2, window_bounds = array<i64: 1, 384>}, {transform_indices = @transform_3, window_bounds = array<i64: 16, 384>}]} {
    %c0 = arith.constant 0 : index
    %c0_0 = arith.constant 0 : index
    %0 = vector.load %arg1[%c0, %c0_0] : memref<16x32xf32, #tpu.memory_space<vmem>>, vector<16x32xf32>
    %1 = arith.truncf %0 : vector<16x32xf32> to vector<16x32xbf16>
    %2 = arith.extf %1 : vector<16x32xbf16> to vector<16x32xf32>
    %3 = arith.subf %0, %2 : vector<16x32xf32>
    %4 = arith.truncf %3 : vector<16x32xf32> to vector<16x32xbf16>
    %5 = arith.extf %4 : vector<16x32xbf16> to vector<16x32xf32>
    %6 = arith.subf %3, %5 : vector<16x32xf32>
    %7 = arith.truncf %6 : vector<16x32xf32> to vector<16x32xbf16>
    %c0_1 = arith.constant 0 : index
    %c0_2 = arith.constant 0 : index
    %8 = vector.load %arg2[%c0_1, %c0_2] : memref<32x384xbf16, #tpu.memory_space<vmem>>, vector<32x384xbf16>
    %cst = arith.constant dense<0.000000e+00> : vector<16x384xf32>
    %9 = tpu.matmul %1, %8, %cst {dimension_numbers = #tpu.dot_dimension_numbers<[1], [0], [0], [1], [0, 0, 1, 1], [], []>} : vector<16x32xbf16>, vector<32x384xbf16>, vector<16x384xf32> -> vector<16x384xf32>
    %cst_3 = arith.constant dense<0.000000e+00> : vector<16x384xf32>
    %10 = tpu.matmul %4, %8, %cst_3 {dimension_numbers = #tpu.dot_dimension_numbers<[1], [0], [0], [1], [0, 0, 1, 1], [], []>} : vector<16x32xbf16>, vector<32x384xbf16>, vector<16x384xf32> -> vector<16x384xf32>
    %11 = arith.addf %9, %10 : vector<16x384xf32>
    %cst_4 = arith.constant dense<0.000000e+00> : vector<16x384xf32>
    %12 = tpu.matmul %7, %8, %cst_4 {dimension_numbers = #tpu.dot_dimension_numbers<[1], [0], [0], [1], [0, 0, 1, 1], [], []>} : vector<16x32xbf16>, vector<32x384xbf16>, vector<16x384xf32> -> vector<16x384xf32>
    %13 = arith.addf %11, %12 : vector<16x384xf32>
    %c0_5 = arith.constant 0 : index
    %c0_6 = arith.constant 0 : index
    %14 = vector.load %arg3[%c0_5, %c0_6] : memref<1x384xf32, #tpu.memory_space<vmem>>, vector<1x384xf32>
    %15 = vector.broadcast %14 : vector<1x384xf32> to vector<16x384xf32>
    %16 = arith.addf %13, %15 : vector<16x384xf32>
    %17 = math.sin %16 : vector<16x384xf32>
    %c0_7 = arith.constant 0 : index
    %c0_8 = arith.constant 0 : index
    %18 = vector.load %arg4[%c0_7, %c0_8] : memref<16x384xf32, #tpu.memory_space<vmem>>, vector<16x384xf32>
    tpu.vector_store %arg4[%c0_7, %c0_8], %17 {strides = array<i32>} : memref<16x384xf32, #tpu.memory_space<vmem>>, vector<16x384xf32>,
    return
  }
  func.func @transform_0(%arg0: i32) -> (i32, i32) {
    %c0_i32 = arith.constant 0 : i32
    %c0_i32_0 = arith.constant 0 : i32
    return %arg0, %c0_i32 : i32, i32
  }
  func.func @transform_1(%arg0: i32) -> (i32, i32) {
    %c0_i32 = arith.constant 0 : i32
    %c0_i32_0 = arith.constant 0 : i32
    %c0_i32_1 = arith.constant 0 : i32
    return %c0_i32, %c0_i32_0 : i32, i32
  }
  func.func @transform_2(%arg0: i32) -> (i32, i32) {
    %c0_i32 = arith.constant 0 : i32
    %c0_i32_0 = arith.constant 0 : i32
    %c0_i32_1 = arith.constant 0 : i32
    return %c0_i32, %c0_i32_0 : i32, i32
  }
  func.func @transform_3(%arg0: i32) -> (i32, i32) {
    %c0_i32 = arith.constant 0 : i32
    %c0_i32_0 = arith.constant 0 : i32
    return %arg0, %c0_i32 : i32, i32
  }
}

</mosaic_0001>

<bundles_post_ra>
// kernel: tpu_custom_call.1
= control target key start
LH: loop header
LB: loop body
LE: loop exit
PB: predicated region body
PF: predicated region fallthrough
CT: control target
= control target key end

     0   :  { %8 = vsyncpa [#allocation3], 0  ;;  %s1753_s0 = inlined_call_operand.hbm [shape: f32[16,32], index: 0, kind: input, shape index: {}]   ;;  %s1754_s1 = inlined_call_operand.hbm [shape: bf16[32,384], index: 1, kind: input, shape index: {}]   ;;  %s1755_s2 = inlined_call_operand.vmem [shape: f32[1,384], index: 2, kind: input, shape index: {}]   ;;  %s1756_s3 = inlined_call_operand.hbm [shape: f32[16,384], index: 3, kind: output, shape index: {}]  }
   0x1   :  { %9 = vsyncpa [#allocation6], 0 }
   0x2   :  { %10 = vsyncpa [#allocation4], 0  ;;  %s1259_s12 = smov [#allocation2]   ;;  %s1187_s16 = scalar_lea.hbm %s1753_s0, 256 }
   0x3   :  { %s16_s13 = sshll.u32 %s1259_s12, 4  ;;  %p1188_p0 = scmp.ne.s32.totalorder %s1753_s0, %s1187_s16  ;;  %s17_s13 = int_to_ptr.vmem [resolvable:$true] %s16_s13 }
   0x4   :  { %p1191_p1 = scmp.lt.u32.totalorder %s1187_s16, %s1753_s0 }
   0x6   :  { %p1193_p2 = pnand %p1191_p1, %p1188_p0 }
   0x8   :  { %1196 = shalt.err (!%p1193_p2)
}
   0x9   :  { %s1197_s21 = scalar_lea.vmem %s17_s13, 256  ;;  %p1202_p4 = scmp.lt.s32.totalorder %s17_s13, %s17_s13 }
   0xa   :  { %p1198_p3 = scmp.ne.s32.totalorder %s17_s13, %s1197_s21  ;;  %p1203_p5 = scmp.lt.s32.totalorder %s1197_s21, %s1197_s21 }
   0xc   :  { %p1204_p6 = por %p1203_p5, %p1202_p4 }
   0xe   :  { %p1205_p7 = pnand %p1204_p6, %p1198_p3 }
  0x10   :  { %1208 = shalt.err (!%p1205_p7)
}
  0x11   :  { %s1260_s22 = smov 128   ;;  %s1261_s23 = smov 8  }
  0x12   :  { %22 = dma.hbm_to_vmem [thread:$0]  %s1753_s0, 256, %s17_s13, [#allocation3], %s1260_s22, %s1260_s22, %s1261_s23  }
  0x13   :  { %s1262_s26 = smov [#allocation5]   ;;  %s1209_s30 = scalar_lea.hbm %s1754_s1, 768 }
  0x14   :  { %s28_s27 = sshll.u32 %s1262_s26, 4  ;;  %p1210_p8 = scmp.ne.s32.totalorder %s1754_s1, %s1209_s30  ;;  %s29_s27 = int_to_ptr.vmem [resolvable:$true] %s28_s27 }
  0x15   :  { %p1213_p9 = scmp.lt.u32.totalorder %s1209_s30, %s1754_s1 }
  0x17   :  { %p1215_p10 = pnand %p1213_p9, %p1210_p8 }
  0x19   :  { %1218 = shalt.err (!%p1215_p10)
}
  0x1a   :  { %s1219_s8 = scalar_lea.vmem %s29_s27, 768  ;;  %p1224_p12 = scmp.lt.s32.totalorder %s29_s27, %s29_s27 }
  0x1b   :  { %p1220_p11 = scmp.ne.s32.totalorder %s29_s27, %s1219_s8  ;;  %p1225_p13 = scmp.lt.s32.totalorder %s1219_s8, %s1219_s8 }
  0x1d   :  { %p1226_p0 = por %p1225_p13, %p1224_p12 }
  0x1f   :  { %p1227_p1 = pnand %p1226_p0, %p1220_p11 }
  0x21   :  { %1230 = shalt.err (!%p1227_p1)
}
  0x22   :  { %s1263_s0 = smov 192   ;;  %s1264_s9 = smov 12  }
  0x23   :  { %34 = dma.hbm_to_vmem [thread:$0]  %s1754_s1, 768, %s29_s27, [#allocation6], %s1263_s0, %s1263_s0, %s1264_s9  }
  0x24   :  { %1253 = dma.done.wait [#allocation3], 256  }
  0x25   :  { %1254 = vsyncadd [#allocation3], 4294967040 }
  0x26   :  { %1255 = dma.done.wait [#allocation6], 768  }
  0x27   :  { %1256 = vsyncadd [#allocation6], 4294966528  ;;  %v1265_v0 = vmov 0.0   ;;  %vm1266_vm0 = vmmov 0   ;;  %v1267_v1 = vmov 0   ;;  %v44_v8 = vld [vmem:[#allocation2] sm:$0xff]  ;;  %v367_v25 = vlaneseq }
  0x28   :  { %1081 = vmatprep.subr.bf16.mxu1 %v1265_v0  ;;  %1085 = vmatprep.mubr.msk.bf16.mxu1 %vm1266_vm0, %v1265_v0  ;;  %v1155_v2 = vld [vmem:[#allocation5 + $0x4] ss:$12 sps:$4 sm:$0xff]   ;;  %v1157_v3 = vld [vmem:[#allocation5 + $0x8] ss:$12 sps:$4 sm:$0xff]   ;;  %v1158_v4 = vld [vmem:[#allocation5] ss:$12 sps:$4 sm:$0xff]  }
  0x29   :  { %133 = vmatprep.mubr.bf16.mxu0 %v1267_v1  ;;  %101 = vmatprep.subr.bf16.mxu0 %v1155_v2  ;;  %v1159_v5 = vld [vmem:[#allocation5 + $0x1c] ss:$12 sps:$4 sm:$0xff]   ;;  %v1161_v6 = vld [vmem:[#allocation5 + $0x20] ss:$12 sps:$4 sm:$0xff]   ;;  %v1162_v7 = vld [vmem:[#allocation5 + $0x18] ss:$12 sps:$4 sm:$0xff]  }
  0x2a   :  { %1082 = vmatpush3.bf16.msra.mxu1 %v1157_v3  ;;  %102 = vmatpush1.bf16.msra.mxu0 %v1158_v4  ;;  %v45_v9 = vld [vmem:[#allocation2 + $0x8] sm:$0xff]  ;;  %vm97_vm1 = vcmask 261120   ;;  %v368_v26 = vshrl.u32 %v367_v25, 7  ;;  %v365_v34 = vld [vmem:[%s1755_s2] sm:$0x7]  ;;  %s1274_s2 = smov [#allocation7]  }
  0x2b   :  { %1083 = vmatprep.subr.bf16.mxu1 %v1265_v0  ;;  %103 = vmatprep.subr.bf16.mxu0 %v1159_v5  ;;  %v46_v10 = vpack.c.bf16 %v45_v9, %v44_v8  ;;  %s1023_s13 = sshll.u32 %s1274_s2, 4  ;;  %s1024_s13 = int_to_ptr.vmem [resolvable:$true] %s1023_s13 }
  0x2c   :  { %v377_v33 = vsub.s32 2, %v368_v26  ;;  %v369_v39 = vsub.s32 0, %v368_v26  ;;  %v373_v49 = vsub.s32 1, %v368_v26  ;;  %s1231_s14 = scalar_lea.vmem %s1024_s13, 768  ;;  %p1236_p3 = scmp.lt.s32.totalorder %s1024_s13, %s1024_s13 }
  0x2d   :  { %v47_v11 = vunpack.c.l.bf16 %v46_v10  ;;  %v48_v12 = vunpack.c.h.bf16 %v46_v10  ;;  %p1232_p2 = scmp.ne.s32.totalorder %s1024_s13, %s1231_s14  ;;  %p1237_p4 = scmp.lt.s32.totalorder %s1231_s14, %s1231_s14 }
  0x2e   :  { %1084 = vmatpush3.bf16.msra.mxu1 %v1161_v6  ;;  %104 = vmatpush1.bf16.msra.mxu0 %v1162_v7  ;;  %v378_v35 = vrot.slane %v365_v34, %v377_v33  ;;  %v1337_v46 = vrot.slane %v365_v34, %v369_v39  ;;  %v1352_v61 = vrot.slane %v365_v34, %v373_v49 }
  0x2f   :  { %1089 = vmatprep.subr.bf16.mxu1 %v1265_v0  ;;  %188 = vmatprep.subr.bf16.mxu0 %v1155_v2  ;;  %v49_v13 = vsub.f32 %v44_v8, %v47_v11  ;;  %v50_v14 = vsub.f32 %v45_v9, %v48_v12  ;;  %v1268_v12 = vmov 683565275   ;;  %p1238_p5 = por %p1237_p4, %p1236_p3 }
  0x31   :  { %v51_v15 = vpack.c.bf16 %v50_v14, %v49_v13  ;;  %p1239_p6 = pnand %p1238_p5, %p1232_p2 }
  0x33   :  { %1086 = vmatmul.mubr.msk.bf16.vlgmr.msra.gmra.mrb[0].mxu1 %vm97_vm1, %v51_v15  ;;  %1042 = vmatmul.mubr.msk.bf16.vlgmr.msra.gmra.mrb[0].mxu0 %vm97_vm1, %v51_v15  ;;  %v52_v16 = vunpack.c.l.bf16 %v51_v15  ;;  %v53_v17 = vunpack.c.h.bf16 %v51_v15 }
  0x34   :  { %1090 = vmatpush3.bf16.msra.mxu1 %v1157_v3  ;;  %189 = vmatpush1.bf16.msra.mxu0 %v1158_v4 }
  0x35   :  { %1091 = vmatprep.subr.bf16.mxu1 %v1265_v0  ;;  %190 = vmatprep.subr.bf16.mxu0 %v1159_v5  ;;  %v54_v18 = vsub.f32 %v49_v13, %v52_v16  ;;  %v55_v19 = vsub.f32 %v50_v14, %v53_v17  ;;  %v1269_v14 = vmov 2475754826   ;;  %v1270_v16 = vmov 2131351028  }
  0x36   :  { %1093 = vmatprep.mubr.msk.bf16.mxu1 %vm1266_vm0, %v1265_v0  ;;  %220 = vmatprep.mubr.bf16.mxu0 %v1267_v1 }
  0x37   :  { %v56_v20 = vpack.c.bf16 %v55_v19, %v54_v18  ;;  %v1271_v18 = vmov 2102212464  }
  0x38   :  { %1092 = vmatpush3.bf16.msra.mxu1 %v1161_v6  ;;  %191 = vmatpush1.bf16.msra.mxu0 %v1162_v7 }
  0x39   :  { %1097 = vmatprep.subr.bf16.mxu1 %v1265_v0  ;;  %275 = vmatprep.subr.bf16.mxu0 %v1155_v2 }
  0x3b   :  { %1094 = vmatmul.mubr.msk.bf16.vlgmr.msra.gmra.mrb[4].mxu1 %vm97_vm1, %v46_v10 }
  0x3c   :  { %1098 = vmatpush3.bf16.msra.mxu1 %v1157_v3  ;;  %1101 = vmatprep.mubr.msk.bf16.mxu1 %vm1266_vm0, %v1265_v0 }
  0x3d   :  { %1099 = vmatprep.subr.bf16.mxu1 %v1265_v0 }
  0x3f   :  { %1044 = vmatmul.mubr.msk.bf16.vlgmr.msra.gmra.mrb[0].mxu0 %vm97_vm1, %v46_v10 }
  0x40   :  { %1100 = vmatpush3.bf16.msra.mxu1 %v1161_v6  ;;  %276 = vmatpush1.bf16.msra.mxu0 %v1158_v4 }
  0x41   :  { %277 = vmatprep.subr.bf16.mxu0 %v1159_v5  ;;  %307 = vmatprep.mubr.bf16.mxu0 %v1267_v1 }
  0x43   :  { %1102 = vmatmul.mubr.msk.bf16.vlgmr.msra.gmra.mrb[8].mxu1 %vm97_vm1, %v56_v20 }
  0x44   :  { %278 = vmatpush1.bf16.msra.mxu0 %v1162_v7 }
  0x4b   :  { %1046 = vmatmul.mubr.msk.bf16.vlgmr.msra.gmra.mrb[0].mxu0 %vm97_vm1, %v56_v20  ;;  %v1272_v20 = vmov 920167782  }
 0x106   :  { %v178_v21 = vpop.f32.mrb[0].mxu1 }
 0x107   :  { %v1087_v22 = vpop.f32.mrb[1].mxu1 }
 0x108   :  { %v181_v23 = vpop.f32.mrb[2].mxu1 }
 0x109   :  { %v1088_v24 = vpop.f32.mrb[3].mxu1 }
 0x10e   :  { %v265_v27 = vpop.f32.mrb[4].mxu1 }
 0x10f   :  { %v266_v28 = vadd.f32 %v265_v27, %v178_v21  ;;  %v1095_v29 = vpop.f32.mrb[5].mxu1  ;;  %v1273_v27 = vmov 1326507024  }
 0x110   :  { %v268_v30 = vpop.f32.mrb[6].mxu1 }
 0x111   :  { %v269_v31 = vadd.f32 %v268_v30, %v181_v23  ;;  %v1096_v32 = vpop.f32.mrb[7].mxu1 }
 0x116   :  { %v352_v36 = vpop.f32.mrb[8].mxu1 }
 0x117   :  { %v361_v37 = vadd.f32 %v352_v36, %v266_v28  ;;  %v1103_v38 = vpop.f32.mrb[9].mxu1 }
 0x118   :  { %v355_v40 = vpop.f32.mrb[10].mxu1 }
 0x119   :  { %v1333_v41 = vadd.f32 %v378_v35, %v361_v37  ;;  %v364_v42 = vadd.f32 %v355_v40, %v269_v31  ;;  %v1104_v43 = vpop.f32.mrb[11].mxu1 }
 0x11b   :  { %v596_v44 = vand.u32 2147483647, %v1333_v41  ;;  %v599_v45 = vand.u32 2139095040, %v1333_v41  ;;  %v1339_v47 = vadd.f32 %v378_v35, %v364_v42  ;;  %vm598_vm15 = vcmp.lt.s32.totalorder %v1333_v41, 0 }
 0x11d   :  { %v600_v48 = vshrl.u32 %v599_v45, 23  ;;  %v603_v50 = vand.u32 8388607, %v596_v44  ;;  %v908_v51 = vand.u32 2147483647, %v1339_v47  ;;  %v911_v52 = vand.u32 2139095040, %v1339_v47 }
 0x11e   :  { %v309_v53 = vpop.f32.mrb[0].mxu0  ;;  %vm1448_vm0 = vcmp.le.f32.partialorder %v596_v44, 0.7853982  ;;  %vm910_vm1 = vcmp.lt.s32.totalorder %v1339_v47, 0 }
 0x11f   :  { %v1056_v54 = vadd.s32 4294967169, %v600_v48  ;;  %v1346_v55 = vadd.f32 %v1337_v46, %v309_v53  ;;  %v311_v56 = vpop.f32.mrb[1].mxu0  ;;  %v912_v57 = vshrl.u32 %v911_v52, 23  ;;  %v915_v58 = vand.u32 8388607, %v908_v51 }
 0x120   :  { %v1350_v59 = vpop.f32.mrb[2].mxu0  ;;  %v604_v63 = vor.u32 8388608, %v603_v50  ;;  %v1362_v10 = vadd.f32 %v1352_v61, %v311_v56 }
 0x121   :  { %v606_v60 = vadd.s32 1, %v1056_v54  ;;  %v1354_v62 = vpop.f32.mrb[3].mxu0  ;;  %v1068_v0 = vadd.s32 4294967169, %v912_v57  ;;  %v916_v1 = vor.u32 8388608, %v915_v58  ;;  %v391_v2 = vand.u32 2139095040, %v1346_v55 }
 0x122   :  { %v1357_v7 = vshll.u32 %v604_v63, 8 }
 0x123   :  { %vm607_vm2 = vcmp.gt.s32.totalorder %v606_v60, 0  ;;  %v918_v4 = vadd.s32 1, %v1068_v0  ;;  %v1359_v8 = vshll.u32 %v916_v1, 8  ;;  %v392_v9 = vshrl.u32 %v391_v2, 23 }
 0x124   :  { %v608_v3 = vsel %vm607_vm2, %v606_v60, 0 }
 0x125   :  { %v609_v5 = vshrl.u32 %v608_v3, 5  ;;  %v610_v6 = vand.u32 31, %v608_v3  ;;  %vm919_vm3 = vcmp.gt.s32.totalorder %v918_v4, 0  ;;  %v1048_v52 = vadd.s32 4294967169, %v392_v9 }
 0x126   :  { %v920_v32 = vsel %vm919_vm3, %v918_v4, 0 }
 0x127   :  { %v611_v11 = vsub.s32 32, %v610_v6  ;;  %v613_v13 = vshll.u32 %v1268_v12, %v610_v6  ;;  %v616_v15 = vshll.u32 %v1269_v14, %v610_v6  ;;  %v619_v17 = vshll.u32 %v1270_v16, %v610_v6 }
 0x128   :  { %v622_v19 = vshll.u32 %v1271_v18, %v610_v6  ;;  %v625_v21 = vshll.u32 %v1272_v20, %v610_v6  ;;  %vm628_vm4 = vcmp.lt.s32.totalorder %v609_v5, 1  ;;  %vm629_vm5 = vcmp.lt.s32.totalorder %v609_v5, 2 }
 0x129   :  { %v614_v22 = vshrl.u32 %v1269_v14, %v611_v11  ;;  %v617_v23 = vshrl.u32 %v1270_v16, %v611_v11  ;;  %v620_v24 = vshrl.u32 %v1271_v18, %v611_v11  ;;  %v612_v25 = vshrl.u32 %v1268_v12, %v611_v11 }
 0x12a   :  { %v623_v26 = vshrl.u32 %v1272_v20, %v611_v11  ;;  %v626_v28 = vshrl.u32 %v1273_v27, %v611_v11  ;;  %vm630_vm6 = vcmp.lt.s32.totalorder %v609_v5, 3  ;;  %vm631_vm7 = vcmp.lt.s32.totalorder %v609_v5, 4 }
 0x12b   :  { %v615_v29 = vor.u32 %v614_v22, %v613_v13  ;;  %v618_v30 = vor.u32 %v617_v23, %v616_v15  ;;  %v621_v31 = vor.u32 %v620_v24, %v619_v17  ;;  %v922_v35 = vand.u32 31, %v920_v32 }
 0x12c   :  { %v624_v33 = vor.u32 %v623_v26, %v622_v19  ;;  %v627_v34 = vor.u32 %v626_v28, %v625_v21  ;;  %v921_v56 = vshrl.u32 %v920_v32, 5 }
 0x12d   :  { %v632_v36 = vsel %vm628_vm4, %v612_v25, %v615_v29  ;;  %v633_v37 = vsel %vm631_vm7, %v621_v31, 2102212464  ;;  %v636_v38 = vsel %vm628_vm4, %v615_v29, %v618_v30  ;;  %v640_v39 = vsel %vm628_vm4, %v618_v30, %v621_v31 }
 0x12e   :  { %v634_v40 = vsel %vm630_vm6, %v618_v30, %v633_v37  ;;  %v637_v42 = vsel %vm631_vm7, %v624_v33, 920167782  ;;  %v641_v43 = vsel %vm631_vm7, %v627_v34, 1326507024  ;;  %v923_v45 = vsub.s32 32, %v922_v35 }
 0x12f   :  { %v635_v48 = vsel %vm629_vm5, %v632_v36, %v634_v40  ;;  %v638_v49 = vsel %vm630_vm6, %v621_v31, %v637_v42  ;;  %v642_v50 = vsel %vm630_vm6, %v624_v33, %v641_v43  ;;  %v925_v57 = vshll.u32 %v1268_v12, %v922_v35 }
 0x130   :  { %v639_v53 = vsel %vm629_vm5, %v636_v38, %v638_v49  ;;  %v643_v54 = vsel %vm629_vm5, %v640_v39, %v642_v50  ;;  %v651_v1 = vmul.u32 %v1357_v7, %v635_v48  ;;  %v926_v2 = vshrl.u32 %v1269_v14, %v923_v45 }
 0x131   :  { %v1387_v58 = vmul.u32.u64.low %v1357_v7, %v643_v54  ;;  %v1388_v60 = vmul.u32.u64.high %v1357_v7, %v643_v54, %v1387_v58  ;;  %v1391_v63 = vmul.u32.u64.low %v1357_v7, %v639_v53  ;;  %v1392_v0 = vmul.u32.u64.high %v1357_v7, %v639_v53, %v1391_v63 }
 0x132   :  { %v928_v3 = vshll.u32 %v1269_v14, %v922_v35  ;;  %v929_v4 = vshrl.u32 %v1270_v16, %v923_v45  ;;  %v931_v5 = vshll.u32 %v1270_v16, %v922_v35  ;;  %v932_v6 = vshrl.u32 %v1271_v18, %v923_v45 }
 0x133   :  { %v934_v9 = vshll.u32 %v1271_v18, %v922_v35  ;;  %v935_v11 = vshrl.u32 %v1272_v20, %v923_v45  ;;  %v927_v13 = vor.u32 %v926_v2, %v925_v57  ;;  %v937_v17 = vshll.u32 %v1272_v20, %v922_v35 }
 0x134   :  { %v930_v15 = vor.u32 %v929_v4, %v928_v3  ;;  %v938_v7 = vshrl.u32 %v1273_v27, %v923_v45  ;;  %vm653_vm8 = vc.u32 %v1388_v60, %v1391_v63  ;;  %v654_v19 = vadd.s32 1, %v1392_v0 }
 0x135   :  { %v924_v21 = vshrl.u32 %v1268_v12, %v923_v45  ;;  %v933_v22 = vor.u32 %v932_v6, %v931_v5  ;;  %v936_v23 = vor.u32 %v935_v11, %v934_v9  ;;  %vm940_vm9 = vcmp.lt.s32.totalorder %v921_v56, 1 }
 0x136   :  { %v939_v24 = vor.u32 %v938_v7, %v937_v17  ;;  %vm941_vm10 = vcmp.lt.s32.totalorder %v921_v56, 2  ;;  %v655_v25 = vsel %vm653_vm8, %v654_v19, %v1392_v0  ;;  %vm942_vm11 = vcmp.lt.s32.totalorder %v921_v56, 3 }
 0x137   :  { %vm943_vm12 = vcmp.lt.s32.totalorder %v921_v56, 4  ;;  %v948_v26 = vsel %vm940_vm9, %v927_v13, %v930_v15  ;;  %v656_v28 = vadd.s32 %v655_v25, %v651_v1  ;;  %v952_v31 = vsel %vm940_vm9, %v930_v15, %v933_v22 }
 0x138   :  { %v945_v29 = vsel %vm943_vm12, %v933_v22, 2102212464  ;;  %v949_v30 = vsel %vm943_vm12, %v936_v23, 920167782  ;;  %v944_v32 = vsel %vm940_vm9, %v924_v21, %v927_v13  ;;  %v953_v34 = vsel %vm943_vm12, %v939_v24, 1326507024 }
 0x139   :  { %v950_v33 = vsel %vm942_vm11, %v933_v22, %v949_v30  ;;  %v398_v35 = vadd.s32 1, %v1048_v52  ;;  %v657_v36 = vadd.s32 536870912, %v656_v28  ;;  %v946_v37 = vsel %vm942_vm11, %v930_v15, %v945_v29 }
 0x13a   :  { %v951_v38 = vsel %vm941_vm10, %v948_v26, %v950_v33  ;;  %v954_v39 = vsel %vm942_vm11, %v936_v23, %v953_v34  ;;  %v388_v45 = vand.u32 2147483647, %v1346_v55  ;;  %v947_v52 = vsel %vm941_vm10, %v944_v32, %v946_v37 }
 0x13b   :  { %v955_v40 = vsel %vm941_vm10, %v952_v31, %v954_v39  ;;  %v1413_v42 = vmul.u32.u64.low %v1359_v8, %v951_v38  ;;  %v1414_v43 = vmul.u32.u64.high %v1359_v8, %v951_v38, %v1413_v42  ;;  %v658_v48 = vshrl.u32 %v657_v36, 30 }
 0x13c   :  { %v1419_v49 = vmul.u32.u64.low %v1359_v8, %v955_v40  ;;  %v1420_v50 = vmul.u32.u64.high %v1359_v8, %v955_v40, %v1419_v49  ;;  %vm399_vm13 = vcmp.gt.s32.totalorder %v398_v35, 0  ;;  %v495_v58 = vand.u32 2139095040, %v1362_v10 }
 0x13d   :  { %v400_v53 = vsel %vm399_vm13, %v398_v35, 0  ;;  %v659_v54 = vshll.u32 %v658_v48, 30  ;;  %v966_v0 = vadd.s32 1, %v1414_v43  ;;  %v1427_v1 = vand.u32 8388607, %v388_v45 }
 0x13e   :  { %v402_v57 = vand.u32 31, %v400_v53  ;;  %v963_v3 = vmul.u32 %v1359_v8, %v947_v52  ;;  %vm965_vm14 = vc.u32 %v1420_v50, %v1413_v42  ;;  %v496_v9 = vshrl.u32 %v495_v58, 23 }
 0x13f   :  { %v660_v2 = vsub.s32 %v656_v28, %v659_v54  ;;  %v967_v56 = vsel %vm965_vm14, %v966_v0, %v1414_v43  ;;  %v682_v11 = vsub.s32 4, %v658_v48  ;;  %v396_v13 = vor.u32 8388608, %v1427_v1 }
 0x140   :  { %v403_v4 = vsub.s32 32, %v402_v57  ;;  %v968_v6 = vadd.s32 %v967_v56, %v963_v3  ;;  %v652_v19 = vadd.s32 %v1391_v63, %v1388_v60  ;;  %v401_v21 = vshrl.u32 %v400_v53, 5 }
 0x141   :  { %v662_v5 = vsub.s32 0, %v660_v2  ;;  %v411_v23 = vshll.u32 %v1270_v16, %v402_v57  ;;  %v405_v25 = vshll.u32 %v1268_v12, %v402_v57  ;;  %v1052_v28 = vadd.s32 4294967169, %v496_v9 }
 0x142   :  { %v969_v17 = vadd.s32 536870912, %v968_v6  ;;  %v406_v7 = vshrl.u32 %v1269_v14, %v403_v4  ;;  %v412_v8 = vshrl.u32 %v1271_v18, %v403_v4  ;;  %v409_v22 = vshrl.u32 %v1270_v16, %v403_v4 }
 0x143   :  { %v1057_v15 = vmin.u32 %v662_v5, %v660_v2  ;;  %v415_v26 = vshrl.u32 %v1272_v20, %v403_v4  ;;  %v683_v29 = vsel %vm598_vm15, %v682_v11, %v658_v48  ;;  %v408_v31 = vshll.u32 %v1269_v14, %v402_v57 }
 0x144   :  { %v970_v30 = vshrl.u32 %v969_v17, 30  ;;  %v413_v32 = vor.u32 %v412_v8, %v411_v23  ;;  %v407_v33 = vor.u32 %v406_v7, %v405_v25  ;;  %v414_v34 = vshll.u32 %v1271_v18, %v402_v57 }
 0x145   :  { %v664_v24 = vclz %v1057_v15  ;;  %v418_v35 = vshrl.u32 %v1273_v27, %v403_v4  ;;  %v410_v37 = vor.u32 %v409_v22, %v408_v31  ;;  %v417_v38 = vshll.u32 %v1272_v20, %v402_v57 }
 0x146   :  { %v971_v36 = vshll.u32 %v970_v30, 30  ;;  %vm423_vm2 = vcmp.lt.s32.totalorder %v401_v21, 4  ;;  %v404_v39 = vshrl.u32 %v1268_v12, %v403_v4  ;;  %v416_v44 = vor.u32 %v415_v26, %v414_v34 }
 0x147   :  { %v1058_v63 = vadd.s32 4294967294, %v664_v24  ;;  %v425_v40 = vsel %vm423_vm2, %v413_v32, 2102212464  ;;  %v419_v49 = vor.u32 %v418_v35, %v417_v38  ;;  %vm420_vm4 = vcmp.lt.s32.totalorder %v401_v21, 1 }
 0x148   :  { %v1458_v48 = vsub.s32 %v968_v6, %v971_v36  ;;  %v994_v54 = vsub.s32 4, %v970_v30  ;;  %vm422_vm5 = vcmp.lt.s32.totalorder %v401_v21, 3  ;;  %v424_v57 = vsel %vm420_vm4, %v404_v39, %v407_v33 }
 0x149   :  { %vm1059_vm3 = vcmp.lt.s32.totalorder %v1058_v63, 0  ;;  %v426_v1 = vsel %vm422_vm5, %v410_v37, %v425_v40  ;;  %v428_v4 = vsel %vm420_vm4, %v407_v33, %v410_v37  ;;  %v429_v5 = vsel %vm423_vm2, %v416_v44, 920167782 }
 0x14a   :  { %v667_v43 = vsel %vm1059_vm3, 0, %v1058_v63  ;;  %v974_v0 = vsub.s32 0, %v1458_v48  ;;  %v430_v9 = vsel %vm422_vm5, %v413_v32, %v429_v5  ;;  %v432_v11 = vsel %vm420_vm4, %v410_v37, %v413_v32 }
 0x14b   :  { %v668_v52 = vsub.s32 32, %v667_v43  ;;  %v672_v53 = vsub.s32 4294967266, %v667_v43  ;;  %v669_v58 = vshll.u32 %v660_v2, %v667_v43  ;;  %v433_v15 = vsel %vm423_vm2, %v419_v49, 1326507024 }
 0x14c   :  { %v1069_v6 = vmin.u32 %v974_v0, %v1458_v48  ;;  %vm421_vm6 = vcmp.lt.s32.totalorder %v401_v21, 2  ;;  %v434_v2 = vsel %vm422_vm5, %v416_v44, %v433_v15  ;;  %v685_v8 = vsel %vm1448_vm0, 0, %v683_v29 }
 0x14d   :  { %v670_v3 = vshrl.u32 %v652_v19, %v668_v52  ;;  %v673_v56 = vadd.s32 127, %v672_v53  ;;  %v431_v22 = vsel %vm421_vm6, %v428_v4, %v430_v9  ;;  %v436_v23 = vshll.u32 %v396_v13, 8 }
 0x14e   :  { %v976_v19 = vclz %v1069_v6  ;;  %v995_v25 = vsel %vm910_vm1, %v994_v54, %v970_v30  ;;  %v427_v26 = vsel %vm421_vm6, %v424_v57, %v426_v1  ;;  %v435_v31 = vsel %vm421_vm6, %v432_v11, %v434_v2 }
 0x14f   :  { %v671_v17 = vor.u32 %v670_v3, %v669_v58  ;;  %v674_v7 = vshll.u32 %v673_v56, 23  ;;  %v1471_v33 = vmul.u32.u64.low %v436_v23, %v435_v31  ;;  %v1472_v34 = vmul.u32.u64.high %v436_v23, %v435_v31, %v1471_v33 }
 0x150   :  { %v1070_v63 = vadd.s32 4294967294, %v976_v19  ;;  %v1474_v21 = vmul.u32.u64.low %v436_v23, %v431_v22  ;;  %v1475_v36 = vmul.u32.u64.high %v436_v23, %v431_v22, %v1474_v21  ;;  %v502_v29 = vadd.s32 1, %v1052_v28 }
 0x151   :  { %v675_v24 = vor.u32 4788187, %v674_v7  ;;  %v678_v32 = vcvt.s32.f32 %v671_v17  ;;  %vm1480_vm7 = vcmp.le.f32.partialorder %v908_v51, 0.7853982  ;;  %v964_v30 = vadd.s32 %v1413_v42, %v1420_v50 }
 0x152   :  { %vm1071_vm8 = vcmp.lt.s32.totalorder %v1070_v63, 0  ;;  %v492_v37 = vand.u32 2147483647, %v1362_v10  ;;  %v689_v39 = vadd.s32 3, %v685_v8  ;;  %vm503_vm9 = vcmp.gt.s32.totalorder %v502_v29, 0 }
 0x153   :  { %v676_v35 = vand.u32 2147483647, %v675_v24  ;;  %v979_v44 = vsel %vm1071_vm8, 0, %v1070_v63  ;;  %v997_v28 = vsel %vm1480_vm7, 0, %v995_v25  ;;  %v443_v49 = vmul.u32 %v436_v23, %v427_v26 }
 0x154   :  { %v980_v40 = vsub.s32 32, %v979_v44  ;;  %v984_v43 = vsub.s32 4294967266, %v979_v44  ;;  %vm445_vm10 = vc.u32 %v1472_v34, %v1474_v21  ;;  %v446_v52 = vadd.s32 1, %v1475_v36 }
 0x155   :  { %v679_v38 = vmul.f32 %v678_v32, %v676_v35  ;;  %v504_v42 = vsel %vm503_vm9, %v502_v29, 0  ;;  %v981_v50 = vshll.u32 %v1458_v48, %v979_v44  ;;  %v1001_v57 = vadd.s32 3, %v997_v28 }
 0x156   :  { %v982_v53 = vshrl.u32 %v964_v30, %v980_v40  ;;  %v985_v54 = vadd.s32 127, %v984_v43  ;;  %v506_v58 = vand.u32 31, %v504_v42  ;;  %v447_v1 = vsel %vm445_vm10, %v446_v52, %v1475_v36 }
 0x157   :  { %v680_v51 = vxor.u32 2147483648, %v679_v38  ;;  %v499_v3 = vand.u32 8388607, %v492_v37  ;;  %v448_v6 = vadd.s32 %v447_v1, %v443_v49  ;;  %v1501_v48 = vand.u32 3, %v689_v39 }
 0x158   :  { %v983_v4 = vor.u32 %v982_v53, %v981_v50  ;;  %v986_v5 = vshll.u32 %v985_v54, 23  ;;  %v507_v9 = vsub.s32 32, %v506_v58  ;;  %v1503_v7 = vand.u32 3, %v1001_v57 }
 0x159   :  { %v681_v0 = vsel %vm598_vm15, %v680_v51, %v679_v38  ;;  %v449_v15 = vadd.s32 536870912, %v448_v6  ;;  %v500_v2 = vor.u32 8388608, %v499_v3  ;;  %v1507_v8 = vadd.f32 %v1337_v46, %v1350_v59 }
 0x15a   :  { %v684_v56 = vsel %vm1448_vm0, %v1333_v41, %v681_v0  ;;  %v987_v11 = vor.u32 4788187, %v986_v5  ;;  %v990_v17 = vcvt.s32.f32 %v983_v4  ;;  %v510_v22 = vshrl.u32 %v1269_v14, %v507_v9 }
 0x15b   :  { %1163 = vcosq.f32 %v684_v56  ;;  %v1509_v19 = vshrl.u32 %v449_v15, 30  ;;  %v513_v23 = vshrl.u32 %v1270_v16, %v507_v9  ;;  %vm695_vm11 = vcmp.eq.s32.totalorder %v1501_v48, 2 }
 0x15c   :  { %1165 = vsinq.f32 %v684_v56  ;;  %v988_v60 = vand.u32 2147483647, %v987_v11  ;;  %v1514_v24 = vshrl.u32 %v504_v42, 5  ;;  %v516_v25 = vshrl.u32 %v1271_v18, %v507_v9 }
 0x15d   :  { %v518_v26 = vshll.u32 %v1271_v18, %v506_v58  ;;  %v519_v31 = vshrl.u32 %v1272_v20, %v507_v9  ;;  %vm692_vm12 = vcmp.eq.s32.totalorder %v1501_v48, 0  ;;  %v451_v59 = vshll.u32 %v1509_v19, 30 }
 0x15e   :  { %v991_v46 = vmul.f32 %v990_v17, %v988_v60  ;;  %v509_v32 = vshll.u32 %v1268_v12, %v506_v58  ;;  %v512_v63 = vshll.u32 %v1269_v14, %v506_v58  ;;  %vm691_vm13 = vcmp.lt.s32.totalorder %v1501_v48, 2 }
 0x15f   :  { %v515_v33 = vshll.u32 %v1270_v16, %v506_v58  ;;  %v520_v35 = vor.u32 %v519_v31, %v518_v26  ;;  %v522_v36 = vshrl.u32 %v1273_v27, %v507_v9  ;;  %v1526_v29 = vshll.u32 %v500_v2, 8 }
 0x160   :  { %vm688_vm14 = vweird.f32 %v1333_v41  ;;  %v992_v30 = vxor.u32 2147483648, %v991_v46  ;;  %v1529_v38 = vsub.s32 %v448_v6, %v451_v59  ;;  %v511_v39 = vor.u32 %v510_v22, %v509_v32 }
 0x161   :  { %v514_v44 = vor.u32 %v513_v23, %v512_v63  ;;  %v508_v40 = vshrl.u32 %v1268_v12, %v507_v9  ;;  %v517_v43 = vor.u32 %v516_v25, %v515_v33  ;;  %v521_v28 = vshll.u32 %v1272_v20, %v506_v58 }
 0x162   :  { %v703_v49 = vand.u32 2139095040, %v1507_v8  ;;  %v993_v51 = vsel %vm910_vm1, %v992_v30, %v991_v46  ;;  %v454_v52 = vsub.s32 0, %v1529_v38  ;;  %vm524_vm15 = vcmp.lt.s32.totalorder %v1514_v24, 1 }
 0x163   :  { %vm527_vm0 = vcmp.lt.s32.totalorder %v1514_v24, 4  ;;  %v996_v50 = vsel %vm1480_vm7, %v1339_v47, %v993_v51  ;;  %v523_v53 = vor.u32 %v522_v36, %v521_v28  ;;  %vm526_vm2 = vcmp.lt.s32.totalorder %v1514_v24, 3 }
 0x164   :  { %v533_v54 = vsel %vm527_vm0, %v520_v35, 920167782  ;;  %1167 = vcosq.f32 %v996_v50  ;;  %v1049_v57 = vmin.u32 %v454_v52, %v1529_v38  ;;  %v532_v1 = vsel %vm524_vm15, %v511_v39, %v514_v44 }
 0x165   :  { %v1164_v42 = vpop.eup %1163  ;;  %1169 = vsinq.f32 %v996_v50  ;;  %v529_v13 = vsel %vm527_vm0, %v517_v43, 2102212464  ;;  %v534_v56 = vsel %vm526_vm2, %v517_v43, %v533_v54  ;;  %vm525_vm1 = vcmp.lt.s32.totalorder %v1514_v24, 2 }
 0x166   :  { %v1166_v58 = vpop.eup %1165  ;;  %v696_v0 = vxor.u32 2147483648, %v1164_v42  ;;  %v456_v5 = vclz %v1049_v57  ;;  %v704_v6 = vshrl.u32 %v703_v49, 23  ;;  %v528_v11 = vsel %vm524_vm15, %v508_v40, %v511_v39 }
 0x167   :  { %v693_v3 = vxor.u32 2147483648, %v1166_v58  ;;  %v535_v15 = vsel %vm525_vm1, %v532_v1, %v534_v56  ;;  %v536_v17 = vsel %vm524_vm15, %v514_v44, %v517_v43  ;;  %v530_v22 = vsel %vm526_vm2, %v514_v44, %v529_v13 }
 0x168   :  { %v697_v4 = vsel %vm695_vm11, %v696_v0, %v1166_v58  ;;  %v1050_v60 = vadd.s32 4294967294, %v456_v5  ;;  %v537_v23 = vsel %vm527_vm0, %v523_v53, 1326507024  ;;  %v474_v48 = vsub.s32 4, %v1509_v19 }
 0x169   :  { %v694_v9 = vsel %vm692_vm12, %v1164_v42, %v693_v3  ;;  %v538_v26 = vsel %vm526_vm2, %v520_v35, %v537_v23  ;;  %v1574_v31 = vmul.u32.u64.low %v1526_v29, %v535_v15  ;;  %v1575_v46 = vmul.u32.u64.high %v1526_v29, %v535_v15, %v1574_v31 }
 0x16a   :  { %v698_v2 = vsel %vm691_vm13, %v694_v9, %v697_v4  ;;  %vm1051_vm3 = vcmp.lt.s32.totalorder %v1050_v60, 0  ;;  %v539_v59 = vsel %vm525_vm1, %v536_v17, %v538_v26  ;;  %v1060_v32 = vadd.s32 4294967169, %v704_v6 }
 0x16b   :  { %v699_v25 = vsel %vm688_vm14, nan, %v698_v2  ;;  %vm1000_vm4 = vweird.f32 %v1339_v47  ;;  %vm390_vm5 = vcmp.lt.s32.totalorder %v1346_v55, 0  ;;  %v459_v41 = vsel %vm1051_vm3, 0, %v1050_v60 }
 0x16c   :  { %1014 = vst [vmem:[#allocation7 + $0x10] sm:$0xff] %v699_v25  ;;  %v1584_v63 = vmul.u32.u64.low %v1526_v29, %v539_v59  ;;  %v1585_v33 = vmul.u32.u64.high %v1526_v29, %v539_v59, %v1584_v63  ;;  %v444_v35 = vadd.s32 %v1474_v21, %v1472_v34  ;;  %v460_v36 = vsub.s32 32, %v459_v41 }
 0x16d   :  { %v464_v30 = vsub.s32 4294967266, %v459_v41  ;;  %v531_v39 = vsel %vm525_vm1, %v528_v11, %v530_v22  ;;  %vm1007_vm6 = vcmp.eq.s32.totalorder %v1503_v7, 2  ;;  %vm1594_vm7 = vcmp.le.f32.partialorder %v388_v45, 0.7853982 }
 0x16e   :  { %v550_v40 = vadd.s32 1, %v1575_v46  ;;  %v710_v43 = vadd.s32 1, %v1060_v32  ;;  %v1168_v28 = vpop.eup %1167  ;;  %v461_v49 = vshll.u32 %v1529_v38, %v459_v41  ;;  %v462_v34 = vshrl.u32 %v444_v35, %v460_v36 }
 0x16f   :  { %v465_v21 = vadd.s32 127, %v464_v30  ;;  %v475_v24 = vsel %vm390_vm5, %v474_v48, %v1509_v19  ;;  %v1170_v51 = vpop.eup %1169  ;;  %v1008_v52 = vxor.u32 2147483648, %v1168_v28  ;;  %v547_v42 = vmul.u32 %v1526_v29, %v531_v39 }
 0x170   :  { %vm549_vm8 = vc.u32 %v1585_v33, %v1574_v31  ;;  %vm711_vm9 = vcmp.gt.s32.totalorder %v710_v43, 0  ;;  %v1005_v45 = vxor.u32 2147483648, %v1170_v51  ;;  %v463_v50 = vor.u32 %v462_v34, %v461_v49 }
 0x171   :  { %v466_v53 = vshll.u32 %v465_v21, 23  ;;  %v551_v54 = vsel %vm549_vm8, %v550_v40, %v1575_v46  ;;  %vm1004_vm10 = vcmp.eq.s32.totalorder %v1503_v7, 0  ;;  %v1009_v38 = vsel %vm1007_vm6, %v1008_v52, %v1170_v51 }
 0x172   :  { %v552_v58 = vadd.s32 %v551_v54, %v547_v42  ;;  %v712_v19 = vsel %vm711_vm9, %v710_v43, 0  ;;  %vm1003_vm11 = vcmp.lt.s32.totalorder %v1503_v7, 2  ;;  %v1006_v0 = vsel %vm1004_vm10, %v1168_v28, %v1005_v45 }
 0x173   :  { %v467_v29 = vor.u32 4788187, %v466_v53  ;;  %v700_v57 = vand.u32 2147483647, %v1507_v8  ;;  %v1010_v1 = vsel %vm1003_vm11, %v1006_v0, %v1009_v38  ;;  %v477_v3 = vsel %vm1594_vm7, 0, %v475_v24 }
 0x174   :  { %v553_v13 = vadd.s32 536870912, %v552_v58  ;;  %v714_v56 = vand.u32 31, %v712_v19  ;;  %v1011_v4 = vsel %vm1000_vm4, nan, %v1010_v1  ;;  %v470_v6 = vcvt.s32.f32 %v463_v50 }
 0x175   :  { %v468_v5 = vand.u32 2147483647, %v467_v29  ;;  %1017 = vst [vmem:[#allocation7 + $0x28] sm:$0xff] %v1011_v4  ;;  %v481_v15 = vadd.s32 3, %v477_v3  ;;  %v707_v17 = vand.u32 8388607, %v700_v57  ;;  %v1645_v44 = vadd.f32 %v1352_v61, %v1354_v62 }
 0x176   :  { %v1616_v9 = vshrl.u32 %v553_v13, 30  ;;  %v715_v11 = vsub.s32 32, %v714_v56  ;;  %v713_v2 = vshrl.u32 %v712_v19, 5  ;;  %v717_v22 = vshll.u32 %v1268_v12, %v714_v56 }
 0x177   :  { %v471_v7 = vmul.f32 %v470_v6, %v468_v5  ;;  %v720_v47 = vshll.u32 %v1269_v14, %v714_v56  ;;  %v723_v32 = vshll.u32 %v1270_v16, %v714_v56  ;;  %v726_v41 = vshll.u32 %v1271_v18, %v714_v56 }
 0x178   :  { %v555_v60 = vshll.u32 %v1616_v9, 30  ;;  %v718_v23 = vshrl.u32 %v1269_v14, %v715_v11  ;;  %v721_v26 = vshrl.u32 %v1270_v16, %v715_v11  ;;  %v724_v46 = vshrl.u32 %v1271_v18, %v715_v11 }
 0x179   :  { %v472_v25 = vxor.u32 2147483648, %v471_v7  ;;  %v727_v48 = vshrl.u32 %v1272_v20, %v715_v11  ;;  %v730_v63 = vshrl.u32 %v1273_v27, %v715_v11  ;;  %v729_v39 = vshll.u32 %v1272_v20, %v714_v56 }
 0x17a   :  { %v1627_v59 = vsub.s32 %v552_v58, %v555_v60  ;;  %v719_v36 = vor.u32 %v718_v23, %v717_v22  ;;  %v722_v30 = vor.u32 %v721_v26, %v720_v47  ;;  %v725_v28 = vor.u32 %v724_v46, %v723_v32 }
 0x17b   :  { %v473_v35 = vsel %vm390_vm5, %v472_v25, %v471_v7  ;;  %v728_v49 = vor.u32 %v727_v48, %v726_v41  ;;  %v1639_v34 = vand.u32 3, %v481_v15  ;;  %v708_v21 = vor.u32 8388608, %v707_v17 }
 0x17c   :  { %v476_v40 = vsel %vm1594_vm7, %v1346_v55, %v473_v35  ;;  %v558_v43 = vsub.s32 0, %v1627_v59  ;;  %v731_v24 = vor.u32 %v730_v63, %v729_v39  ;;  %vm732_vm12 = vcmp.lt.s32.totalorder %v713_v2, 1 }
 0x17d   :  { %1171 = vcosq.f32 %v476_v40  ;;  %vm735_vm13 = vcmp.lt.s32.totalorder %v713_v2, 4  ;;  %v716_v52 = vshrl.u32 %v1268_v12, %v715_v11  ;;  %v740_v42 = vsel %vm732_vm12, %v719_v36, %v722_v30 }
 0x17e   :  { %1173 = vsinq.f32 %v476_v40  ;;  %v1053_v51 = vmin.u32 %v558_v43, %v1627_v59  ;;  %v741_v45 = vsel %vm735_vm13, %v728_v49, 920167782  ;;  %vm734_vm14 = vcmp.lt.s32.totalorder %v713_v2, 3 }
 0x17f   :  { %v737_v53 = vsel %vm735_vm13, %v725_v28, 2102212464  ;;  %v744_v54 = vsel %vm732_vm12, %v722_v30, %v725_v28  ;;  %vm733_vm15 = vcmp.lt.s32.totalorder %v713_v2, 2  ;;  %v742_v38 = vsel %vm734_vm14, %v725_v28, %v741_v45 }
 0x180   :  { %v560_v50 = vclz %v1053_v51  ;;  %v745_v58 = vsel %vm735_vm13, %v731_v24, 1326507024  ;;  %v748_v19 = vshll.u32 %v708_v21, 8  ;;  %v736_v29 = vsel %vm732_vm12, %v716_v52, %v719_v36 }
 0x181   :  { %v743_v1 = vsel %vm733_vm15, %v740_v42, %v742_v38  ;;  %v746_v3 = vsel %vm734_vm14, %v728_v49, %v745_v58  ;;  %v738_v13 = vsel %vm734_vm14, %v722_v30, %v737_v53  ;;  %v807_v6 = vand.u32 2139095040, %v1645_v44 }
 0x182   :  { %v1054_v0 = vadd.s32 4294967294, %v560_v50  ;;  %v747_v56 = vsel %vm733_vm15, %v744_v54, %v746_v3  ;;  %v1649_v4 = vmul.u32.u64.low %v748_v19, %v743_v1  ;;  %v1650_v5 = vmul.u32.u64.high %v748_v19, %v743_v1, %v1649_v4 }
 0x183   :  { %v1653_v61 = vmul.u32.u64.low %v748_v19, %v747_v56  ;;  %v1654_v62 = vmul.u32.u64.high %v748_v19, %v747_v56, %v1653_v61  ;;  %vm483_vm2 = vcmp.lt.s32.totalorder %v1639_v34, 2  ;;  %vm494_vm1 = vcmp.lt.s32.totalorder %v1362_v10, 0 }
 0x184   :  { %vm1055_vm0 = vcmp.lt.s32.totalorder %v1054_v0, 0  ;;  %v548_v11 = vadd.s32 %v1574_v31, %v1585_v33  ;;  %v739_v60 = vsel %vm733_vm15, %v736_v29, %v738_v13  ;;  %v808_v22 = vshrl.u32 %v807_v6, 23 }
 0x185   :  { %v563_v7 = vsel %vm1055_vm0, 0, %v1054_v0  ;;  %vm484_vm3 = vcmp.eq.s32.totalorder %v1639_v34, 0  ;;  %vm487_vm4 = vcmp.eq.s32.totalorder %v1639_v34, 2  ;;  %v578_v47 = vsub.s32 4, %v1616_v9 }
 0x186   :  { %v564_v15 = vsub.s32 32, %v563_v7  ;;  %v568_v17 = vsub.s32 4294967266, %v563_v7  ;;  %v758_v25 = vadd.s32 1, %v1650_v5  ;;  %v565_v48 = vshll.u32 %v1627_v59, %v563_v7 }
 0x187   :  { %v1172_v23 = vpop.eup %1171  ;;  %v755_v41 = vmul.u32 %v748_v19, %v739_v60  ;;  %vm757_vm5 = vc.u32 %v1654_v62, %v1649_v4  ;;  %v1064_v2 = vadd.s32 4294967169, %v808_v22  ;;  %v804_v43 = vand.u32 2147483647, %v1645_v44 }
 0x188   :  { %v1174_v26 = vpop.eup %1173  ;;  %v488_v46 = vxor.u32 2147483648, %v1172_v23  ;;  %v566_v31 = vshrl.u32 %v548_v11, %v564_v15  ;;  %v569_v33 = vadd.s32 127, %v568_v17  ;;  %v759_v30 = vsel %vm757_vm5, %v758_v25, %v1650_v5 }
 0x189   :  { %v485_v32 = vxor.u32 2147483648, %v1174_v26  ;;  %v760_v40 = vadd.s32 %v759_v30, %v755_v41  ;;  %v814_v59 = vadd.s32 1, %v1064_v2  ;;  %vm480_vm6 = vweird.f32 %v1346_v55 }
 0x18a   :  { %v489_v63 = vsel %vm487_vm4, %v488_v46, %v1174_v26  ;;  %v567_v35 = vor.u32 %v566_v31, %v565_v48  ;;  %v570_v36 = vshll.u32 %v569_v33, 23  ;;  %v579_v21 = vsel %vm494_vm1, %v578_v47, %v1616_v9 }
 0x18b   :  { %v486_v39 = vsel %vm484_vm3, %v1172_v23, %v485_v32  ;;  %v761_v51 = vadd.s32 536870912, %v760_v40  ;;  %vm815_vm7 = vcmp.gt.s32.totalorder %v814_v59, 0  ;;  %vm1681_vm8 = vcmp.le.f32.partialorder %v492_v37, 0.7853982 }
 0x18c   :  { %v490_v28 = vsel %vm483_vm2, %v486_v39, %v489_v63  ;;  %v571_v49 = vor.u32 4788187, %v570_v36  ;;  %v574_v55 = vcvt.s32.f32 %v567_v35  ;;  %v816_v45 = vsel %vm815_vm7, %v814_v59, 0 }
 0x18d   :  { %v491_v24 = vsel %vm480_vm6, nan, %v490_v28  ;;  %v581_v34 = vsel %vm1681_vm8, 0, %v579_v21  ;;  %v1687_v50 = vshrl.u32 %v761_v51, 30  ;;  %v811_v9 = vand.u32 8388607, %v804_v43 }
 0x18e   :  { %1012 = vst [vmem:[#allocation7] sm:$0xff] %v491_v24  ;;  %v572_v42 = vand.u32 2147483647, %v571_v49  ;;  %v818_v53 = vand.u32 31, %v816_v45  ;;  %v585_v19 = vadd.s32 3, %v581_v34  ;;  %v817_v1 = vshrl.u32 %v816_v45, 5 }
 0x18f   :  { %v763_v38 = vshll.u32 %v1687_v50, 30  ;;  %v812_v29 = vor.u32 8388608, %v811_v9  ;;  %v756_v21 = vadd.s32 %v1649_v4, %v1654_v62  ;;  %vm702_vm3 = vcmp.lt.s32.totalorder %v1507_v8, 0 }
 0x190   :  { %v575_v54 = vmul.f32 %v574_v55, %v572_v42  ;;  %v819_v58 = vsub.s32 32, %v818_v53  ;;  %v821_v56 = vshll.u32 %v1268_v12, %v818_v53  ;;  %v824_v7 = vshll.u32 %v1269_v14, %v818_v53 }
 0x191   :  { %v1692_v0 = vsub.s32 %v760_v40, %v763_v38  ;;  %v827_v15 = vshll.u32 %v1270_v16, %v818_v53  ;;  %v830_v60 = vshll.u32 %v1271_v18, %v818_v53  ;;  %v586_v26 = vand.u32 3, %v585_v19 }
 0x192   :  { %v576_v37 = vxor.u32 2147483648, %v575_v54  ;;  %v822_v3 = vshrl.u32 %v1269_v14, %v819_v58  ;;  %v825_v5 = vshrl.u32 %v1270_v16, %v819_v58  ;;  %v828_v61 = vshrl.u32 %v1271_v18, %v819_v58 }
 0x193   :  { %v766_v11 = vsub.s32 0, %v1692_v0  ;;  %v831_v22 = vshrl.u32 %v1272_v20, %v819_v58  ;;  %v833_v48 = vshll.u32 %v1272_v20, %v818_v53  ;;  %v834_v31 = vshrl.u32 %v1273_v27, %v819_v58 }
 0x194   :  { %v577_v13 = vsel %vm494_vm1, %v576_v37, %v575_v54  ;;  %v823_v17 = vor.u32 %v822_v3, %v821_v56  ;;  %v826_v47 = vor.u32 %v825_v5, %v824_v7  ;;  %v829_v25 = vor.u32 %v828_v61, %v827_v15 }
 0x195   :  { %v580_v6 = vsel %vm1681_vm8, %v1362_v10, %v577_v13  ;;  %v1061_v23 = vmin.u32 %v766_v11, %v1692_v0  ;;  %v832_v46 = vor.u32 %v831_v22, %v830_v60  ;;  %v820_v16 = vshrl.u32 %v1268_v12, %v819_v58 }
 0x196   :  { %1175 = vcosq.f32 %v580_v6  ;;  %vm836_vm9 = vcmp.lt.s32.totalorder %v817_v1, 1  ;;  %v852_v33 = vshll.u32 %v812_v29, 8  ;;  %v835_v32 = vor.u32 %v834_v31, %v833_v48 }
 0x197   :  { %1177 = vsinq.f32 %v580_v6  ;;  %v768_v14 = vclz %v1061_v23  ;;  %vm837_vm10 = vcmp.lt.s32.totalorder %v817_v1, 2  ;;  %vm838_vm11 = vcmp.lt.s32.totalorder %v817_v1, 3 }
 0x198   :  { %vm839_vm12 = vcmp.lt.s32.totalorder %v817_v1, 4  ;;  %v844_v2 = vsel %vm836_vm9, %v823_v17, %v826_v47  ;;  %v840_v35 = vsel %vm836_vm9, %v820_v16, %v823_v17  ;;  %v848_v30 = vsel %vm836_vm9, %v826_v47, %v829_v25 }
 0x199   :  { %v1062_v18 = vadd.s32 4294967294, %v768_v14  ;;  %v841_v41 = vsel %vm839_vm12, %v829_v25, 2102212464  ;;  %v845_v63 = vsel %vm839_vm12, %v832_v46, 920167782  ;;  %vm591_vm14 = vcmp.eq.s32.totalorder %v586_v26, 2 }
 0x19a   :  { %v846_v36 = vsel %vm838_vm11, %v829_v25, %v845_v63  ;;  %v849_v39 = vsel %vm839_vm12, %v835_v32, 1326507024  ;;  %v842_v20 = vsel %vm838_vm11, %v826_v47, %v841_v41  ;;  %vm588_vm15 = vcmp.eq.s32.totalorder %v586_v26, 0 }
 0x19b   :  { %vm1063_vm13 = vcmp.lt.s32.totalorder %v1062_v18, 0  ;;  %v847_v27 = vsel %vm837_vm10, %v844_v2, %v846_v36  ;;  %v850_v40 = vsel %vm838_vm11, %v832_v46, %v849_v39  ;;  %v843_v42 = vsel %vm837_vm10, %v840_v35, %v842_v20 }
 0x19c   :  { %v771_v12 = vsel %vm1063_vm13, 0, %v1062_v18  ;;  %v851_v59 = vsel %vm837_vm10, %v848_v30, %v850_v40  ;;  %v1714_v28 = vmul.u32.u64.low %v852_v33, %v847_v27  ;;  %v1715_v49 = vmul.u32.u64.high %v852_v33, %v847_v27, %v1714_v28 }
 0x19d   :  { %v772_v24 = vsub.s32 32, %v771_v12  ;;  %v776_v51 = vsub.s32 4294967266, %v771_v12  ;;  %v1720_v55 = vmul.u32.u64.low %v852_v33, %v851_v59  ;;  %v1721_v45 = vmul.u32.u64.high %v852_v33, %v851_v59, %v1720_v55 }
 0x19e   :  { %v773_v53 = vshll.u32 %v1692_v0, %v771_v12  ;;  %v862_v37 = vadd.s32 1, %v1715_v49  ;;  %vm587_vm0 = vcmp.lt.s32.totalorder %v586_v26, 2  ;;  %v859_v1 = vmul.u32 %v852_v33, %v843_v42 }
 0x19f   :  { %v774_v54 = vshrl.u32 %v756_v21, %v772_v24  ;;  %v777_v38 = vadd.s32 127, %v776_v51  ;;  %vm861_vm2 = vc.u32 %v1721_v45, %v1714_v28  ;;  %vm584_vm1 = vweird.f32 %v1362_v10 }
 0x1a0   :  { %v1176_v52 = vpop.eup %1175  ;;  %v863_v0 = vsel %vm861_vm2, %v862_v37, %v1715_v49  ;;  %v786_v15 = vsub.s32 4, %v1687_v50  ;;  %vm701_vm4 = vcmp.le.f32.partialorder %v700_v57, 0.7853982  ;;  %v860_v2 = vadd.s32 %v1714_v28, %v1721_v45 }
 0x1a1   :  { %v1178_v34 = vpop.eup %1177  ;;  %v592_v9 = vxor.u32 2147483648, %v1176_v52  ;;  %v775_v62 = vor.u32 %v774_v54, %v773_v53  ;;  %v778_v19 = vshll.u32 %v777_v38, 23  ;;  %v864_v5 = vadd.s32 %v863_v0, %v859_v1 }
 0x1a2   :  { %v589_v58 = vxor.u32 2147483648, %v1178_v34  ;;  %v787_v23 = vsel %vm702_vm3, %v786_v15, %v1687_v50  ;;  %vm792_vm9 = vweird.f32 %v1507_v8  ;;  %vm806_vm10 = vcmp.lt.s32.totalorder %v1645_v44, 0 }
 0x1a3   :  { %v593_v4 = vsel %vm591_vm14, %v592_v9, %v1178_v34  ;;  %v779_v13 = vor.u32 4788187, %v778_v19  ;;  %v782_v6 = vcvt.s32.f32 %v775_v62  ;;  %v865_v11 = vadd.s32 536870912, %v864_v5 }
 0x1a4   :  { %v590_v29 = vsel %vm588_vm15, %v1176_v52, %v589_v58  ;;  %v789_v26 = vsel %vm701_vm4, 0, %v787_v23  ;;  %vm805_vm11 = vcmp.le.f32.partialorder %v804_v43, 0.7853982  ;;  %vm896_vm15 = vweird.f32 %v1645_v44 }
 0x1a5   :  { %v594_v3 = vsel %vm587_vm0, %v590_v29, %v593_v4  ;;  %v780_v61 = vand.u32 2147483647, %v779_v13  ;;  %v866_v17 = vshrl.u32 %v865_v11, 30  ;;  %v793_v31 = vadd.s32 3, %v789_v26 }
 0x1a6   :  { %v595_v56 = vsel %vm584_vm1, nan, %v594_v3 }
 0x1a7   :  { %1013 = vst [vmem:[#allocation7 + $0x8] sm:$0xff] %v595_v56  ;;  %v783_v7 = vmul.f32 %v782_v6, %v780_v61  ;;  %v867_v22 = vshll.u32 %v866_v17, 30  ;;  %v794_v33 = vand.u32 3, %v793_v31  ;;  %v890_v52 = vsub.s32 4, %v866_v17 }
 0x1a9   :  { %v784_v60 = vxor.u32 2147483648, %v783_v7  ;;  %v868_v25 = vsub.s32 %v864_v5, %v867_v22  ;;  %vm796_vm6 = vcmp.eq.s32.totalorder %v794_v33, 0  ;;  %vm799_vm7 = vcmp.eq.s32.totalorder %v794_v33, 2 }
 0x1aa   :  { %vm795_vm8 = vcmp.lt.s32.totalorder %v794_v33, 2  ;;  %v891_v45 = vsel %vm806_vm10, %v890_v52, %v866_v17 }
 0x1ab   :  { %v785_v10 = vsel %vm702_vm3, %v784_v60, %v783_v7  ;;  %v870_v46 = vsub.s32 0, %v868_v25  ;;  %v893_v34 = vsel %vm805_vm11, 0, %v891_v45 }
 0x1ac   :  { %v788_v47 = vsel %vm701_vm4, %v1507_v8, %v785_v10  ;;  %v897_v9 = vadd.s32 3, %v893_v34 }
 0x1ad   :  { %1179 = vcosq.f32 %v788_v47  ;;  %v1065_v48 = vmin.u32 %v870_v46, %v868_v25 }
 0x1ae   :  { %1181 = vsinq.f32 %v788_v47  ;;  %v898_v53 = vand.u32 3, %v897_v9 }
 0x1af   :  { %v872_v14 = vclz %v1065_v48 }
 0x1b0   :  { %vm903_vm12 = vcmp.eq.s32.totalorder %v898_v53, 2  ;;  %vm900_vm13 = vcmp.eq.s32.totalorder %v898_v53, 0  ;;  %vm899_vm14 = vcmp.lt.s32.totalorder %v898_v53, 2 }
 0x1b1   :  { %v1066_v16 = vadd.s32 4294967294, %v872_v14 }
 0x1b3   :  { %vm1067_vm5 = vcmp.lt.s32.totalorder %v1066_v16, 0 }
 0x1b4   :  { %v875_v18 = vsel %vm1067_vm5, 0, %v1066_v16 }
 0x1b5   :  { %v876_v50 = vsub.s32 32, %v875_v18  ;;  %v880_v63 = vsub.s32 4294967266, %v875_v18  ;;  %v877_v30 = vshll.u32 %v868_v25, %v875_v18 }
 0x1b7   :  { %v1180_v32 = vpop.eup %1179  ;;  %v878_v39 = vshrl.u32 %v860_v2, %v876_v50  ;;  %v881_v20 = vadd.s32 127, %v880_v63 }
 0x1b8   :  { %v1182_v41 = vpop.eup %1181  ;;  %v800_v57 = vxor.u32 2147483648, %v1180_v32 }
 0x1b9   :  { %v797_v35 = vxor.u32 2147483648, %v1182_v41  ;;  %v879_v12 = vor.u32 %v878_v39, %v877_v30  ;;  %v882_v59 = vshll.u32 %v881_v20, 23 }
 0x1ba   :  { %v801_v36 = vsel %vm799_vm7, %v800_v57, %v1182_v41 }
 0x1bb   :  { %v798_v27 = vsel %vm796_vm6, %v1180_v32, %v797_v35  ;;  %v883_v21 = vor.u32 4788187, %v882_v59  ;;  %v886_v24 = vcvt.s32.f32 %v879_v12 }
 0x1bc   :  { %v802_v40 = vsel %vm795_vm8, %v798_v27, %v801_v36 }
 0x1bd   :  { %v803_v49 = vsel %vm792_vm9, nan, %v802_v40  ;;  %v884_v28 = vand.u32 2147483647, %v883_v21 }
 0x1be   :  { %1015 = vst [vmem:[#allocation7 + $0x18] sm:$0xff] %v803_v49 }
 0x1bf   :  { %v887_v51 = vmul.f32 %v886_v24, %v884_v28 }
 0x1c1   :  { %v888_v42 = vxor.u32 2147483648, %v887_v51 }
 0x1c3   :  { %v889_v55 = vsel %vm806_vm10, %v888_v42, %v887_v51 }
 0x1c4   :  { %v892_v8 = vsel %vm805_vm11, %v1645_v44, %v889_v55 }
 0x1c5   :  { %1183 = vcosq.f32 %v892_v8 }
 0x1c6   :  { %1185 = vsinq.f32 %v892_v8 }
 0x1cf   :  { %v1184_v54 = vpop.eup %1183 }
 0x1d0   :  { %v1186_v38 = vpop.eup %1185  ;;  %v904_v58 = vxor.u32 2147483648, %v1184_v54 }
 0x1d1   :  { %v901_v37 = vxor.u32 2147483648, %v1186_v38 }
 0x1d2   :  { %v905_v4 = vsel %vm903_vm12, %v904_v58, %v1186_v38 }
 0x1d3   :  { %v902_v43 = vsel %vm900_vm13, %v1184_v54, %v901_v37 }
 0x1d4   :  { %v906_v62 = vsel %vm899_vm14, %v902_v43, %v905_v4 }
 0x1d5   :  { %v907_v19 = vsel %vm896_vm15, nan, %v906_v62 }
 0x1d6   :  { %1016 = vst [vmem:[#allocation7 + $0x20] sm:$0xff] %v907_v19 }
 0x1d7   :  { %1242 = shalt.err (!%p1239_p6)
}
 0x1d8   :  { %s1243_s17 = scalar_lea.hbm %s1756_s3, 768 }
 0x1d9   :  { %p1244_p7 = scmp.ne.s32.totalorder %s1756_s3, %s1243_s17  ;;  %p1247_p8 = scmp.lt.u32.totalorder %s1243_s17, %s1756_s3 }
 0x1db   :  { %p1249_p9 = pnand %p1247_p8, %p1244_p7 }
 0x1dd   :  { %1252 = shalt.err (!%p1249_p9)
}
 0x1de   :  { %s1275_s22 = smov 384   ;;  %s1276_s23 = smov 24  }
 0x1df   :  { %1029 = dma.vmem_to_hbm [thread:$0]  %s1024_s13, 768, %s1756_s3, [#allocation4], %s1275_s22, %s1275_s22, %s1276_s23  }
 0x1e0   :  { %1257 = dma.done.wait [#allocation4], 768  }
 0x1e1   :  { %1258 = vsyncadd [#allocation4], 4294966528 }
 0x1e2   :  { %1033 = vsyncpa [#allocation3], 1 }
 0x1e3   :  { %1034 = vsyncpa [#allocation6], 1 }
 0x1e4   :  { %1035 = vsyncpa [#allocation4], 1 }

</bundles_post_ra>
